<compile_context>
chip_gen: v5e
topology: v5e:2x2
jax: 0.10.0
libtpu: 0.0.40
codegen_flags: <defaults>
</compile_context>

<pallas_src>
import jax
import jax.numpy as jnp
from jax.experimental import pallas as pl
from jax.experimental.pallas import tpu as pltpu

SUBLANE = 8  # TPU vreg sublane width (second-to-last dim granularity)

PARAM_KEYS = ("w1", "b1", "w2", "b2", "w3", "b3")


def _round_up(x, m):
    return (x + m - 1) // m * m


def qnet_kernel(x_ref, w1_ref, b1_ref, w2_ref, b2_ref, w3_ref, b3_ref, o_ref):
    """Fused forward for one batch tile: 3 MXU matmuls, f32 bias adds, 2 ReLUs.

    The activation cast to the weight dtype happens here (VPU work hidden under
    the HBM-bound pipeline) instead of as a separate XLA pass over HBM, and the
    epilogue casts are fused into the ReLU expressions.
    """
    x = x_ref[...].astype(w1_ref.dtype)
    h1 = jnp.dot(x, w1_ref[...], preferred_element_type=jnp.float32)
    h1 = jnp.maximum(h1 + b1_ref[...].astype(jnp.float32), 0.0).astype(w2_ref.dtype)
    h2 = jnp.dot(h1, w2_ref[...], preferred_element_type=jnp.float32)
    h2 = jnp.maximum(h2 + b2_ref[...].astype(jnp.float32), 0.0).astype(w3_ref.dtype)
    q = jnp.dot(h2, w3_ref[...], preferred_element_type=jnp.float32)
    q = q + b3_ref[...].astype(jnp.float32)
    o_ref[...] = q.astype(o_ref.dtype)


def _vmem_limit_bytes(tb, state_dim, mid_dim, action_dim, param_list, out_itemsize):
    """Scoped-VMEM budget: resident weights (worst case: double-buffered),
    double-buffered activation/output tiles, per-layer temporaries, plus
    headroom.  Clamped to [32 MiB, 64 MiB]: raises v5e's 16 MiB default scoped
    limit and stays within v7x's 64 MiB physical VMEM."""
    w_bytes = sum(int(p.size) * p.dtype.itemsize for p in param_list)
    in_bytes = 2 * tb * state_dim * 4                  # x tile, double-buffered (f32 upper bound)
    out_bytes = 2 * tb * action_dim * out_itemsize     # q tile, double-buffered
    tmp_bytes = 2 * tb * mid_dim * (4 + 2)             # f32 h + narrow copy, 2 hidden layers
    est = 2 * w_bytes + in_bytes + out_bytes + tmp_bytes
    est = int(est * 1.5) + (4 << 20)
    return max(min(est, 64 << 20), 32 << 20)


def qnet_forward(s, params, *, batch_tile=512, out_dtype=jnp.float32):
    """q = relu(relu(s @ W1 + b1) @ W2 + b2) @ W3 + b3.

    s:      (batch, state_dim), any float dtype (cast to weight dtype in-kernel).
    params: dict with w1 (state,mid), b1 (1,mid), w2 (mid,mid), b2 (1,mid),
            w3 (mid,action), b3 (1,action); f32 or bf16 (no padding required).
    Returns (batch, action_dim) in `out_dtype` (use bf16 if downstream allows
    to halve writeback further).
    """
    w1, b1, w2, b2, w3, b3 = (params[k] for k in PARAM_KEYS)
    batch, state_dim = s.shape
    mid_dim = w1.shape[1]
    action_dim = w3.shape[1]

    # Batch tile: multiple of 8 sublanes (or the full batch when it is tiny),
    # capped at `batch_tile` (512 ~ 85% of HBM roofline per tile sweeps; drop to
    # 256 on v7x only if VMEM-tight) and at ~half the batch so the grid has at
    # least 2 steps for v7x megacore sharding whenever the batch allows it.
    batch_tile = max(SUBLANE, batch_tile // SUBLANE * SUBLANE)
    if batch <= SUBLANE:
        tb = batch                      # full-dim block: always a legal block shape
    else:
        tb = min(_round_up(batch, SUBLANE), batch_tile,
                 _round_up(pl.cdiv(batch, 2), SUBLANE))
    grid = (pl.cdiv(batch, tb),)        # ragged last block OK: rows are independent

    vmem_limit = _vmem_limit_bytes(tb, state_dim, mid_dim, action_dim,
                                   (w1, b1, w2, b2, w3, b3),
                                   jnp.dtype(out_dtype).itemsize)

    def run(single_buffer_weights):
        def resident(p):
            # Constant block index -> DMA'd once, stays VMEM-resident across the
            # whole grid.  Single-buffered when supported: it is never
            # re-fetched, so double-buffering would only double weight VMEM.
            if single_buffer_weights:
                return pl.BlockSpec(p.shape, lambda i: (0, 0),
                                    pipeline_mode=pl.Buffered(1))
            return pl.BlockSpec(p.shape, lambda i: (0, 0))

        return pl.pallas_call(
            qnet_kernel,
            out_shape=jax.ShapeDtypeStruct((batch, action_dim), out_dtype),
            grid=grid,
            in_specs=[
                # Activations: batch-tiled; feature dim left at the full
                # (unpadded) array extent -> no padded HBM traffic and no
                # wrapper-side pad/cast pass.
                pl.BlockSpec((tb, state_dim), lambda i: (i, 0)),
                resident(w1), resident(b1),
                resident(w2), resident(b2),
                resident(w3), resident(b3),
            ],
            # Output written directly at (batch, action_dim); masked vst but
            # ~32x fewer HBM bytes than a 128-padded slab + wrapper slice.
            out_specs=pl.BlockSpec((tb, action_dim), lambda i: (i, 0)),
            compiler_params=pltpu.CompilerParams(
                dimension_semantics=("parallel",),   # megacore sharding on v7x
                vmem_limit_bytes=vmem_limit,
            ),
        )(s, w1, b1, w2, b2, w3, b3)

    try:
        return run(single_buffer_weights=True)
    except Exception:
        # pipeline_mode=pl.Buffered(1) not supported by this Pallas build; fall
        # back to default double-buffered resident weights (identical results,
        # just 2x weight VMEM).
        return run(single_buffer_weights=False)


def init_qnet_params(key, state_dim, mid_dim, action_dim, dtype=jnp.float32):
    """nn.Linear-style init: U(-1/sqrt(fan_in), 1/sqrt(fan_in)).  Weights are
    stored (in_features, out_features) so x @ W + b == PyTorch x @ W_pt.T + b."""
    keys = jax.random.split(key, 6)

    def linear(kw, kb, fan_in, fan_out):
        bound = 1.0 / float(fan_in) ** 0.5
        w = jax.random.uniform(kw, (fan_in, fan_out), jnp.float32, -bound, bound)
        b = jax.random.uniform(kb, (1, fan_out), jnp.float32, -bound, bound)
        return w.astype(dtype), b.astype(dtype)

    w1, b1 = linear(keys[0], keys[1], state_dim, mid_dim)
    w2, b2 = linear(keys[2], keys[3], mid_dim, mid_dim)
    w3, b3 = linear(keys[4], keys[5], mid_dim, action_dim)
    return {"w1": w1, "b1": b1, "w2": w2, "b2": b2, "w3": w3, "b3": b3}


if __name__ == "__main__":
    # Small shapes consistent with QNet(state_dim, action_dim, mid_dim).
    batch, state_dim, mid_dim, action_dim = 8, 16, 32, 4

    key = jax.random.PRNGKey(0)
    k_params, k_input = jax.random.split(key)
    params = init_qnet_params(k_params, state_dim, mid_dim, action_dim)
    s = jax.random.normal(k_input, (batch, state_dim), dtype=jnp.float32)

    # f32 params: bit-tight check against the plain-JAX reference.
    q = qnet_forward(s, params)
    jax.block_until_ready(q)

    h1 = jnp.maximum(s @ params["w1"] + params["b1"], 0.0)
    h2 = jnp.maximum(h1 @ params["w2"] + params["b2"], 0.0)
    q_ref = h2 @ params["w3"] + params["b3"]
    assert q.shape == (batch, action_dim)
    assert jnp.allclose(q, q_ref, atol=1e-5, rtol=1e-5)

    # bf16 weight path (halved weight DMA/VMEM, bf16 MXU fast path, f32 accum):
    # loose tolerance vs. the f32 reference, as flagged in the review.
    params_bf16 = {k: v.astype(jnp.bfloat16) for k, v in params.items()}
    q_bf16 = qnet_forward(s, params_bf16)
    jax.block_until_ready(q_bf16)
    assert q_bf16.shape == (batch, action_dim)
    assert jnp.allclose(q_bf16.astype(jnp.float32), q_ref, atol=1e-1, rtol=1e-1)

    print("KERNEL_OK")
</pallas_src>

<mosaic_0001>
module attributes {stable_mosaic.version = 11 : i64} {
  func.func @qnet_kernel(%arg0: i32, %arg1: memref<8x16xf32, #tpu.memory_space<vmem>>, %arg2: memref<16x32xf32, #tpu.memory_space<vmem>>, %arg3: memref<1x32xf32, #tpu.memory_space<vmem>>, %arg4: memref<32x32xf32, #tpu.memory_space<vmem>>, %arg5: memref<1x32xf32, #tpu.memory_space<vmem>>, %arg6: memref<32x4xf32, #tpu.memory_space<vmem>>, %arg7: memref<1x4xf32, #tpu.memory_space<vmem>>, %arg8: memref<8x4xf32, #tpu.memory_space<vmem>>) attributes {dimension_semantics = [#tpu.dimension_semantics<parallel>], iteration_bounds = array<i64: 1>, scalar_prefetch = 0 : i64, scratch_operands = 0 : i64, tpu.core_type = #tpu.core_type<tc>, window_params = [{transform_indices = @transform_0, window_bounds = array<i64: 8, 16>}, {pipeline_mode = #tpu.pipeline_mode<synchronous>, transform_indices = @transform_1, window_bounds = array<i64: 16, 32>}, {pipeline_mode = #tpu.pipeline_mode<synchronous>, transform_indices = @transform_2, window_bounds = array<i64: 1, 32>}, {pipeline_mode = #tpu.pipeline_mode<synchronous>, transform_indices = @transform_3, window_bounds = array<i64: 32, 32>}, {pipeline_mode = #tpu.pipeline_mode<synchronous>, transform_indices = @transform_4, window_bounds = array<i64: 1, 32>}, {pipeline_mode = #tpu.pipeline_mode<synchronous>, transform_indices = @transform_5, window_bounds = array<i64: 32, 4>}, {pipeline_mode = #tpu.pipeline_mode<synchronous>, transform_indices = @transform_6, window_bounds = array<i64: 1, 4>}, {transform_indices = @transform_7, window_bounds = array<i64: 8, 4>}]} {
    %c0 = arith.constant 0 : index
    %c0_0 = arith.constant 0 : index
    %0 = vector.load %arg1[%c0, %c0_0] : memref<8x16xf32, #tpu.memory_space<vmem>>, vector<8x16xf32>
    %c0_1 = arith.constant 0 : index
    %c0_2 = arith.constant 0 : index
    %1 = vector.load %arg2[%c0_1, %c0_2] : memref<16x32xf32, #tpu.memory_space<vmem>>, vector<16x32xf32>
    %cst = arith.constant dense<0.000000e+00> : vector<8x32xf32>
    %2 = tpu.matmul %0, %1, %cst {dimension_numbers = #tpu.dot_dimension_numbers<[1], [0], [0], [1], [0, 0, 1, 1], [], []>} : vector<8x16xf32>, vector<16x32xf32>, vector<8x32xf32> -> vector<8x32xf32>
    %c0_3 = arith.constant 0 : index
    %c0_4 = arith.constant 0 : index
    %3 = vector.load %arg3[%c0_3, %c0_4] : memref<1x32xf32, #tpu.memory_space<vmem>>, vector<1x32xf32>
    %4 = vector.broadcast %3 : vector<1x32xf32> to vector<8x32xf32>
    %5 = arith.addf %2, %4 : vector<8x32xf32>
    %cst_5 = arith.constant 0.000000e+00 : f32
    %6 = vector.broadcast %cst_5 : f32 to vector<8x32xf32>
    %7 = arith.maximumf %5, %6 : vector<8x32xf32>
    %c0_6 = arith.constant 0 : index
    %c0_7 = arith.constant 0 : index
    %8 = vector.load %arg4[%c0_6, %c0_7] : memref<32x32xf32, #tpu.memory_space<vmem>>, vector<32x32xf32>
    %cst_8 = arith.constant dense<0.000000e+00> : vector<8x32xf32>
    %9 = tpu.matmul %7, %8, %cst_8 {dimension_numbers = #tpu.dot_dimension_numbers<[1], [0], [0], [1], [0, 0, 1, 1], [], []>} : vector<8x32xf32>, vector<32x32xf32>, vector<8x32xf32> -> vector<8x32xf32>
    %c0_9 = arith.constant 0 : index
    %c0_10 = arith.constant 0 : index
    %10 = vector.load %arg5[%c0_9, %c0_10] : memref<1x32xf32, #tpu.memory_space<vmem>>, vector<1x32xf32>
    %11 = vector.broadcast %10 : vector<1x32xf32> to vector<8x32xf32>
    %12 = arith.addf %9, %11 : vector<8x32xf32>
    %cst_11 = arith.constant 0.000000e+00 : f32
    %13 = vector.broadcast %cst_11 : f32 to vector<8x32xf32>
    %14 = arith.maximumf %12, %13 : vector<8x32xf32>
    %c0_12 = arith.constant 0 : index
    %c0_13 = arith.constant 0 : index
    %15 = vector.load %arg6[%c0_12, %c0_13] : memref<32x4xf32, #tpu.memory_space<vmem>>, vector<32x4xf32>
    %cst_14 = arith.constant dense<0.000000e+00> : vector<8x4xf32>
    %16 = tpu.matmul %14, %15, %cst_14 {dimension_numbers = #tpu.dot_dimension_numbers<[1], [0], [0], [1], [0, 0, 1, 1], [], []>} : vector<8x32xf32>, vector<32x4xf32>, vector<8x4xf32> -> vector<8x4xf32>
    %c0_15 = arith.constant 0 : index
    %c0_16 = arith.constant 0 : index
    %17 = vector.load %arg7[%c0_15, %c0_16] : memref<1x4xf32, #tpu.memory_space<vmem>>, vector<1x4xf32>
    %18 = vector.broadcast %17 : vector<1x4xf32> to vector<8x4xf32>
    %19 = arith.addf %16, %18 : vector<8x4xf32>
    %c0_17 = arith.constant 0 : index
    %c0_18 = arith.constant 0 : index
    %20 = vector.load %arg8[%c0_17, %c0_18] : memref<8x4xf32, #tpu.memory_space<vmem>>, vector<8x4xf32>
    tpu.vector_store %arg8[%c0_17, %c0_18], %19 {strides = array<i32>} : memref<8x4xf32, #tpu.memory_space<vmem>>, vector<8x4xf32>,
    return
  }
  func.func @transform_0(%arg0: i32) -> (i32, i32) {
    %c0_i32 = arith.constant 0 : i32
    %c0_i32_0 = arith.constant 0 : i32
    return %arg0, %c0_i32 : i32, i32
  }
  func.func @transform_1(%arg0: i32) -> (i32, i32) {
    %c0_i32 = arith.constant 0 : i32
    %c0_i32_0 = arith.constant 0 : i32
    %c0_i32_1 = arith.constant 0 : i32
    return %c0_i32, %c0_i32_0 : i32, i32
  }
  func.func @transform_2(%arg0: i32) -> (i32, i32) {
    %c0_i32 = arith.constant 0 : i32
    %c0_i32_0 = arith.constant 0 : i32
    %c0_i32_1 = arith.constant 0 : i32
    return %c0_i32, %c0_i32_0 : i32, i32
  }
  func.func @transform_3(%arg0: i32) -> (i32, i32) {
    %c0_i32 = arith.constant 0 : i32
    %c0_i32_0 = arith.constant 0 : i32
    %c0_i32_1 = arith.constant 0 : i32
    return %c0_i32, %c0_i32_0 : i32, i32
  }
  func.func @transform_4(%arg0: i32) -> (i32, i32) {
    %c0_i32 = arith.constant 0 : i32
    %c0_i32_0 = arith.constant 0 : i32
    %c0_i32_1 = arith.constant 0 : i32
    return %c0_i32, %c0_i32_0 : i32, i32
  }
  func.func @transform_5(%arg0: i32) -> (i32, i32) {
    %c0_i32 = arith.constant 0 : i32
    %c0_i32_0 = arith.constant 0 : i32
    %c0_i32_1 = arith.constant 0 : i32
    return %c0_i32, %c0_i32_0 : i32, i32
  }
  func.func @transform_6(%arg0: i32) -> (i32, i32) {
    %c0_i32 = arith.constant 0 : i32
    %c0_i32_0 = arith.constant 0 : i32
    %c0_i32_1 = arith.constant 0 : i32
    return %c0_i32, %c0_i32_0 : i32, i32
  }
  func.func @transform_7(%arg0: i32) -> (i32, i32) {
    %c0_i32 = arith.constant 0 : i32
    %c0_i32_0 = arith.constant 0 : i32
    return %arg0, %c0_i32 : i32, i32
  }
}

module attributes {stable_mosaic.version = 11 : i64} {
  func.func @qnet_kernel(%arg0: i32, %arg1: memref<8x16xf32, #tpu.memory_space<vmem>>, %arg2: memref<16x32xf32, #tpu.memory_space<vmem>>, %arg3: memref<1x32xf32, #tpu.memory_space<vmem>>, %arg4: memref<32x32xf32, #tpu.memory_space<vmem>>, %arg5: memref<1x32xf32, #tpu.memory_space<vmem>>, %arg6: memref<32x4xf32, #tpu.memory_space<vmem>>, %arg7: memref<1x4xf32, #tpu.memory_space<vmem>>, %arg8: memref<8x4xf32, #tpu.memory_space<vmem>>) attributes {dimension_semantics = [#tpu.dimension_semantics<parallel>], iteration_bounds = array<i64: 1>, scalar_prefetch = 0 : i64, scratch_operands = 0 : i64, tpu.core_type = #tpu.core_type<tc>, window_params = [{transform_indices = @transform_0, window_bounds = array<i64: 8, 16>}, {pipeline_mode = #tpu.pipeline_mode<synchronous>, transform_indices = @transform_1, window_bounds = array<i64: 16, 32>}, {pipeline_mode = #tpu.pipeline_mode<synchronous>, transform_indices = @transform_2, window_bounds = array<i64: 1, 32>}, {pipeline_mode = #tpu.pipeline_mode<synchronous>, transform_indices = @transform_3, window_bounds = array<i64: 32, 32>}, {pipeline_mode = #tpu.pipeline_mode<synchronous>, transform_indices = @transform_4, window_bounds = array<i64: 1, 32>}, {pipeline_mode = #tpu.pipeline_mode<synchronous>, transform_indices = @transform_5, window_bounds = array<i64: 32, 4>}, {pipeline_mode = #tpu.pipeline_mode<synchronous>, transform_indices = @transform_6, window_bounds = array<i64: 1, 4>}, {transform_indices = @transform_7, window_bounds = array<i64: 8, 4>}]} {
    %c0 = arith.constant 0 : index
    %c0_0 = arith.constant 0 : index
    %0 = vector.load %arg1[%c0, %c0_0] : memref<8x16xf32, #tpu.memory_space<vmem>>, vector<8x16xf32>
    %c0_1 = arith.constant 0 : index
    %c0_2 = arith.constant 0 : index
    %1 = vector.load %arg2[%c0_1, %c0_2] : memref<16x32xf32, #tpu.memory_space<vmem>>, vector<16x32xf32>
    %cst = arith.constant dense<0.000000e+00> : vector<8x32xf32>
    %2 = tpu.matmul %0, %1, %cst {dimension_numbers = #tpu.dot_dimension_numbers<[1], [0], [0], [1], [0, 0, 1, 1], [], []>} : vector<8x16xf32>, vector<16x32xf32>, vector<8x32xf32> -> vector<8x32xf32>
    %c0_3 = arith.constant 0 : index
    %c0_4 = arith.constant 0 : index
    %3 = vector.load %arg3[%c0_3, %c0_4] : memref<1x32xf32, #tpu.memory_space<vmem>>, vector<1x32xf32>
    %4 = vector.broadcast %3 : vector<1x32xf32> to vector<8x32xf32>
    %5 = arith.addf %2, %4 : vector<8x32xf32>
    %cst_5 = arith.constant 0.000000e+00 : f32
    %6 = vector.broadcast %cst_5 : f32 to vector<8x32xf32>
    %7 = arith.maximumf %5, %6 : vector<8x32xf32>
    %c0_6 = arith.constant 0 : index
    %c0_7 = arith.constant 0 : index
    %8 = vector.load %arg4[%c0_6, %c0_7] : memref<32x32xf32, #tpu.memory_space<vmem>>, vector<32x32xf32>
    %cst_8 = arith.constant dense<0.000000e+00> : vector<8x32xf32>
    %9 = tpu.matmul %7, %8, %cst_8 {dimension_numbers = #tpu.dot_dimension_numbers<[1], [0], [0], [1], [0, 0, 1, 1], [], []>} : vector<8x32xf32>, vector<32x32xf32>, vector<8x32xf32> -> vector<8x32xf32>
    %c0_9 = arith.constant 0 : index
    %c0_10 = arith.constant 0 : index
    %10 = vector.load %arg5[%c0_9, %c0_10] : memref<1x32xf32, #tpu.memory_space<vmem>>, vector<1x32xf32>
    %11 = vector.broadcast %10 : vector<1x32xf32> to vector<8x32xf32>
    %12 = arith.addf %9, %11 : vector<8x32xf32>
    %cst_11 = arith.constant 0.000000e+00 : f32
    %13 = vector.broadcast %cst_11 : f32 to vector<8x32xf32>
    %14 = arith.maximumf %12, %13 : vector<8x32xf32>
    %c0_12 = arith.constant 0 : index
    %c0_13 = arith.constant 0 : index
    %15 = vector.load %arg6[%c0_12, %c0_13] : memref<32x4xf32, #tpu.memory_space<vmem>>, vector<32x4xf32>
    %cst_14 = arith.constant dense<0.000000e+00> : vector<8x4xf32>
    %16 = tpu.matmul %14, %15, %cst_14 {dimension_numbers = #tpu.dot_dimension_numbers<[1], [0], [0], [1], [0, 0, 1, 1], [], []>} : vector<8x32xf32>, vector<32x4xf32>, vector<8x4xf32> -> vector<8x4xf32>
    %c0_15 = arith.constant 0 : index
    %c0_16 = arith.constant 0 : index
    %17 = vector.load %arg7[%c0_15, %c0_16] : memref<1x4xf32, #tpu.memory_space<vmem>>, vector<1x4xf32>
    %18 = vector.broadcast %17 : vector<1x4xf32> to vector<8x4xf32>
    %19 = arith.addf %16, %18 : vector<8x4xf32>
    %c0_17 = arith.constant 0 : index
    %c0_18 = arith.constant 0 : index
    %20 = vector.load %arg8[%c0_17, %c0_18] : memref<8x4xf32, #tpu.memory_space<vmem>>, vector<8x4xf32>
    tpu.vector_store %arg8[%c0_17, %c0_18], %19 {strides = array<i32>} : memref<8x4xf32, #tpu.memory_space<vmem>>, vector<8x4xf32>,
    return
  }
  func.func @transform_0(%arg0: i32) -> (i32, i32) {
    %c0_i32 = arith.constant 0 : i32
    %c0_i32_0 = arith.constant 0 : i32
    return %arg0, %c0_i32 : i32, i32
  }
  func.func @transform_1(%arg0: i32) -> (i32, i32) {
    %c0_i32 = arith.constant 0 : i32
    %c0_i32_0 = arith.constant 0 : i32
    %c0_i32_1 = arith.constant 0 : i32
    return %c0_i32, %c0_i32_0 : i32, i32
  }
  func.func @transform_2(%arg0: i32) -> (i32, i32) {
    %c0_i32 = arith.constant 0 : i32
    %c0_i32_0 = arith.constant 0 : i32
    %c0_i32_1 = arith.constant 0 : i32
    return %c0_i32, %c0_i32_0 : i32, i32
  }
  func.func @transform_3(%arg0: i32) -> (i32, i32) {
    %c0_i32 = arith.constant 0 : i32
    %c0_i32_0 = arith.constant 0 : i32
    %c0_i32_1 = arith.constant 0 : i32
    return %c0_i32, %c0_i32_0 : i32, i32
  }
  func.func @transform_4(%arg0: i32) -> (i32, i32) {
    %c0_i32 = arith.constant 0 : i32
    %c0_i32_0 = arith.constant 0 : i32
    %c0_i32_1 = arith.constant 0 : i32
    return %c0_i32, %c0_i32_0 : i32, i32
  }
  func.func @transform_5(%arg0: i32) -> (i32, i32) {
    %c0_i32 = arith.constant 0 : i32
    %c0_i32_0 = arith.constant 0 : i32
    %c0_i32_1 = arith.constant 0 : i32
    return %c0_i32, %c0_i32_0 : i32, i32
  }
  func.func @transform_6(%arg0: i32) -> (i32, i32) {
    %c0_i32 = arith.constant 0 : i32
    %c0_i32_0 = arith.constant 0 : i32
    %c0_i32_1 = arith.constant 0 : i32
    return %c0_i32, %c0_i32_0 : i32, i32
  }
  func.func @transform_7(%arg0: i32) -> (i32, i32) {
    %c0_i32 = arith.constant 0 : i32
    %c0_i32_0 = arith.constant 0 : i32
    return %arg0, %c0_i32 : i32, i32
  }
}

</mosaic_0001>

<bundles_post_ra>
// kernel: tpu_custom_call.1
= control target key start
LH: loop header
LB: loop body
LE: loop exit
PB: predicated region body
PF: predicated region fallthrough
CT: control target
= control target key end

     0   :  { %12 = vsyncpa [#allocation3], 0  ;;  %s308_s0 = inlined_call_operand.hbm [shape: f32[8,16], index: 0, kind: input, shape index: {}]   ;;  %s309_s1 = inlined_call_operand.hbm [shape: f32[16,32], index: 1, kind: input, shape index: {}]   ;;  %s310_s2 = inlined_call_operand.vmem [shape: f32[1,32], index: 2, kind: input, shape index: {}]   ;;  %s311_s3 = inlined_call_operand.vmem [shape: f32[32,32], index: 3, kind: input, shape index: {}]   ;;  %s312_s4 = inlined_call_operand.vmem [shape: f32[1,32], index: 4, kind: input, shape index: {}]   ;;  %s313_s5 = inlined_call_operand.vmem [shape: f32[32,4], index: 5, kind: input, shape index: {}]   ;;  %s314_s6 = inlined_call_operand.vmem [shape: f32[1,4], index: 6, kind: input, shape index: {}]   ;;  %s315_s7 = inlined_call_operand.vmem [shape: f32[8,4], index: 7, kind: output, shape index: {}]  }
   0x1   :  { %s19_s26 = sshll.u32 %s308_s0, 4  ;;  %s20_s26 = int_to_ptr.hbm [resolvable:$true] %s19_s26 }
   0x2   :  { %13 = vsyncpa [#allocation5], 0  ;;  %s222_s27 = smov [#allocation2]   ;;  %s29_s8 = sshll.u32 %s309_s1, 4  ;;  %s30_s8 = int_to_ptr.hbm [resolvable:$true] %s29_s8 }
   0x3   :  { %s21_s28 = sshll.u32 %s222_s27, 4  ;;  %s223_s9 = smov [#allocation4]   ;;  %s22_s28 = int_to_ptr.vmem [resolvable:$true] %s21_s28 }
   0x4   :  { %24 = dma.hbm_to_vmem [thread:$0]  %s20_s26, 128, %s22_s28, [#allocation3]  }
   0x5   :  { %s31_s10 = sshll.u32 %s223_s9, 4  ;;  %s224_s11 = smov 128   ;;  %s32_s10 = int_to_ptr.vmem [resolvable:$true] %s31_s10 }
   0x6   :  { %s225_s12 = smov 8  }
   0x7   :  { %37 = dma.hbm_to_vmem [thread:$0]  %s30_s8, 256, %s32_s10, [#allocation5], %s224_s11, %s224_s11, %s225_s12  }
   0x8   :  { %218 = dma.done.wait [#allocation3], 128  }
   0x9   :  { %219 = vsyncadd [#allocation3], 4294967168 }
   0xa   :  { %220 = dma.done.wait [#allocation5], 256  }
   0xb   :  { %221 = vsyncadd [#allocation5], 4294967040  ;;  %v58_v0 = vld [vmem:[#allocation4 + $0x8] sm:$0xff]  ;;  %v57_v1 = vld [vmem:[#allocation4] sm:$0xff]  ;;  %vm63_vm0 = vcmask 130048   ;;  %vm96_vm1 = vcmask 261120  }
   0xc   :  { %81 = vmatpush.msra.mxu0 %v58_v0  ;;  %v56_v2 = vld [vmem:[#allocation2] sm:$0xff]  ;;  %v91_v3 = vld [vmem:[%s311_s3 + $0x18] sm:$0xff]  ;;  %v90_v4 = vld [vmem:[%s311_s3 + $0x10] sm:$0xff]  ;;  %vm152_vm2 = vcmask 31744  }
   0xd   :  { %112 = vmatpush.msra.mxu1 %v91_v3  ;;  %v89_v5 = vld [vmem:[%s311_s3 + $0x8] sm:$0xff]  ;;  %v88_v6 = vld [vmem:[%s311_s3] sm:$0xff]  ;;  %v124_v7 = vld [vmem:[%s313_s5 + $0x18] sm:$0xff] }
   0xe   :  { %82 = vmatpush.msra.mxu0 %v57_v1  ;;  %144 = vmatpush.msra.mxu2 %v124_v7  ;;  %v167_v8 = vld [vmem:[%s310_s2] ss:$0 sm:$0xff]  ;;  %v123_v12 = vld [vmem:[%s313_s5 + $0x10] sm:$0xff]  ;;  %v122_v13 = vld [vmem:[%s313_s5 + $0x8] sm:$0xff] }
   0xf   :  { %160 = vmatmul.msk.f32.vlgmr.msra.gmra.mxu0 %vm63_vm0, %v56_v2  ;;  %113 = vmatpush.msra.mxu1 %v90_v4  ;;  %v121_v14 = vld [vmem:[%s313_s5] sm:$0xff] }
  0x10   :  { %145 = vmatpush.msra.mxu2 %v123_v12  ;;  %v168_v15 = vld [vmem:[%s312_s4] ss:$0 sm:$0xff] }
  0x11   :  { %114 = vmatpush.msra.mxu1 %v89_v5  ;;  %v169_v19 = vld [vmem:[%s314_s6] ss:$0 sm:$0xff] }
  0x12   :  { %146 = vmatpush.msra.mxu2 %v122_v13 }
  0x13   :  { %115 = vmatpush.msra.mxu1 %v88_v6 }
  0x14   :  { %147 = vmatpush.msra.mxu2 %v121_v14 }
  0x8c   :  { %v84_v9 = vpop.f32.mrf.mxu0 }
  0x8d   :  { %v85_v10 = vadd.f32 %v167_v8, %v84_v9 }
  0x8f   :  { %v87_v11 = vmax.f32 %v85_v10, 0.0 }
  0x91   :  { %161 = vmatmul.msk.f32.vlgmr.msra.gmra.mxu1 %vm96_vm1, %v87_v11 }
 0x10e   :  { %v117_v16 = vpop.f32.mrf.mxu1 }
 0x10f   :  { %v118_v17 = vadd.f32 %v168_v15, %v117_v16 }
 0x111   :  { %v120_v18 = vmax.f32 %v118_v17, 0.0 }
 0x113   :  { %162 = vmatmul.msk.f32.vlgmr.msra.gmra.mxu2 %vm96_vm1, %v120_v18 }
 0x196   :  { %v149_v20 = vpop.f32.mrf.mxu2 }
 0x197   :  { %v150_v21 = vadd.f32 %v169_v19, %v149_v20 }
 0x199   :  { %153 = vst.msk [vmem:[%s315_s7] sm:$0xff] %vm152_vm2, %v150_v21 }
 0x19a   :  { %158 = vsyncpa [#allocation3], 1 }
 0x19b   :  { %159 = vsyncpa [#allocation5], 1 }

// kernel: tpu_custom_call.1
= control target key start
LH: loop header
LB: loop body
LE: loop exit
PB: predicated region body
PF: predicated region fallthrough
CT: control target
= control target key end

     0   :  { %12 = vsyncpa [#allocation3], 0  ;;  %s308_s0 = inlined_call_operand.hbm [shape: f32[8,16], index: 0, kind: input, shape index: {}]   ;;  %s309_s1 = inlined_call_operand.hbm [shape: f32[16,32], index: 1, kind: input, shape index: {}]   ;;  %s310_s2 = inlined_call_operand.vmem [shape: f32[1,32], index: 2, kind: input, shape index: {}]   ;;  %s311_s3 = inlined_call_operand.vmem [shape: f32[32,32], index: 3, kind: input, shape index: {}]   ;;  %s312_s4 = inlined_call_operand.vmem [shape: f32[1,32], index: 4, kind: input, shape index: {}]   ;;  %s313_s5 = inlined_call_operand.vmem [shape: f32[32,4], index: 5, kind: input, shape index: {}]   ;;  %s314_s6 = inlined_call_operand.vmem [shape: f32[1,4], index: 6, kind: input, shape index: {}]   ;;  %s315_s7 = inlined_call_operand.vmem [shape: f32[8,4], index: 7, kind: output, shape index: {}]  }
   0x1   :  { %s19_s26 = sshll.u32 %s308_s0, 4  ;;  %s20_s26 = int_to_ptr.hbm [resolvable:$true] %s19_s26 }
   0x2   :  { %13 = vsyncpa [#allocation5], 0  ;;  %s222_s27 = smov [#allocation2]   ;;  %s29_s8 = sshll.u32 %s309_s1, 4  ;;  %s30_s8 = int_to_ptr.hbm [resolvable:$true] %s29_s8 }
   0x3   :  { %s21_s28 = sshll.u32 %s222_s27, 4  ;;  %s223_s9 = smov [#allocation4]   ;;  %s22_s28 = int_to_ptr.vmem [resolvable:$true] %s21_s28 }
   0x4   :  { %24 = dma.hbm_to_vmem [thread:$0]  %s20_s26, 128, %s22_s28, [#allocation3]  }
   0x5   :  { %s31_s10 = sshll.u32 %s223_s9, 4  ;;  %s224_s11 = smov 128   ;;  %s32_s10 = int_to_ptr.vmem [resolvable:$true] %s31_s10 }
   0x6   :  { %s225_s12 = smov 8  }
   0x7   :  { %37 = dma.hbm_to_vmem [thread:$0]  %s30_s8, 256, %s32_s10, [#allocation5], %s224_s11, %s224_s11, %s225_s12  }
   0x8   :  { %218 = dma.done.wait [#allocation3], 128  }
   0x9   :  { %219 = vsyncadd [#allocation3], 4294967168 }
   0xa   :  { %220 = dma.done.wait [#allocation5], 256  }
   0xb   :  { %221 = vsyncadd [#allocation5], 4294967040  ;;  %v58_v0 = vld [vmem:[#allocation4 + $0x8] sm:$0xff]  ;;  %v57_v1 = vld [vmem:[#allocation4] sm:$0xff]  ;;  %vm63_vm0 = vcmask 130048   ;;  %vm96_vm1 = vcmask 261120  }
   0xc   :  { %81 = vmatpush.msra.mxu0 %v58_v0  ;;  %v56_v2 = vld [vmem:[#allocation2] sm:$0xff]  ;;  %v91_v3 = vld [vmem:[%s311_s3 + $0x18] sm:$0xff]  ;;  %v90_v4 = vld [vmem:[%s311_s3 + $0x10] sm:$0xff]  ;;  %vm152_vm2 = vcmask 31744  }
   0xd   :  { %112 = vmatpush.msra.mxu1 %v91_v3  ;;  %v89_v5 = vld [vmem:[%s311_s3 + $0x8] sm:$0xff]  ;;  %v88_v6 = vld [vmem:[%s311_s3] sm:$0xff]  ;;  %v124_v7 = vld [vmem:[%s313_s5 + $0x18] sm:$0xff] }
   0xe   :  { %82 = vmatpush.msra.mxu0 %v57_v1  ;;  %144 = vmatpush.msra.mxu2 %v124_v7  ;;  %v167_v8 = vld [vmem:[%s310_s2] ss:$0 sm:$0xff]  ;;  %v123_v12 = vld [vmem:[%s313_s5 + $0x10] sm:$0xff]  ;;  %v122_v13 = vld [vmem:[%s313_s5 + $0x8] sm:$0xff] }
   0xf   :  { %160 = vmatmul.msk.f32.vlgmr.msra.gmra.mxu0 %vm63_vm0, %v56_v2  ;;  %113 = vmatpush.msra.mxu1 %v90_v4  ;;  %v121_v14 = vld [vmem:[%s313_s5] sm:$0xff] }
  0x10   :  { %145 = vmatpush.msra.mxu2 %v123_v12  ;;  %v168_v15 = vld [vmem:[%s312_s4] ss:$0 sm:$0xff] }
  0x11   :  { %114 = vmatpush.msra.mxu1 %v89_v5  ;;  %v169_v19 = vld [vmem:[%s314_s6] ss:$0 sm:$0xff] }
  0x12   :  { %146 = vmatpush.msra.mxu2 %v122_v13 }
  0x13   :  { %115 = vmatpush.msra.mxu1 %v88_v6 }
  0x14   :  { %147 = vmatpush.msra.mxu2 %v121_v14 }
  0x8c   :  { %v84_v9 = vpop.f32.mrf.mxu0 }
  0x8d   :  { %v85_v10 = vadd.f32 %v167_v8, %v84_v9 }
  0x8f   :  { %v87_v11 = vmax.f32 %v85_v10, 0.0 }
  0x91   :  { %161 = vmatmul.msk.f32.vlgmr.msra.gmra.mxu1 %vm96_vm1, %v87_v11 }
 0x10e   :  { %v117_v16 = vpop.f32.mrf.mxu1 }
 0x10f   :  { %v118_v17 = vadd.f32 %v168_v15, %v117_v16 }
 0x111   :  { %v120_v18 = vmax.f32 %v118_v17, 0.0 }
 0x113   :  { %162 = vmatmul.msk.f32.vlgmr.msra.gmra.mxu2 %vm96_vm1, %v120_v18 }
 0x196   :  { %v149_v20 = vpop.f32.mrf.mxu2 }
 0x197   :  { %v150_v21 = vadd.f32 %v169_v19, %v149_v20 }
 0x199   :  { %153 = vst.msk [vmem:[%s315_s7] sm:$0xff] %vm152_vm2, %v150_v21 }
 0x19a   :  { %158 = vsyncpa [#allocation3], 1 }
 0x19b   :  { %159 = vsyncpa [#allocation5], 1 }

</bundles_post_ra>
